<compile_context>
chip_gen: v5e
topology: v5e:2x2
jax: 0.10.0
libtpu: 0.0.40
codegen_flags: <defaults>
</compile_context>

<pallas_src>
import functools

import jax
import jax.numpy as jnp
from jax.experimental import pallas as pl
from jax.experimental.pallas import tpu as pltpu


def _rnn_seq_kernel(x_ref, h0_ref, wih_ref, whh_ref, b_ref, wdec_ref, bdec_ref,
                    out_ref, hfin_ref,
                    h_all_ref,
                    *, seq, batch):
    """Whole sequence in one invocation.

    h_t      = tanh(xW_t + h_{t-1} @ W_hh)        (xW = X @ W_ih + b, hoisted)
    logits   = H @ W_dec + b_dec                  (hoisted, lane-dense output slab)
    """
    # Hoisted input projection for all timesteps at once (bias folded in).
    xw = (jnp.dot(x_ref[...], wih_ref[...], preferred_element_type=jnp.float32)
          + b_ref[...])                                    # [seq*batch, hidden]
    w_hh = whh_ref[...]                                    # [hidden, hidden]

    h = h0_ref[...]                                        # [batch, hidden] in vregs
    for t in range(seq):                                   # static, fully unrolled
        lo = t * batch
        pre = xw[lo:lo + batch, :] + jnp.dot(h, w_hh,
                                             preferred_element_type=jnp.float32)
        h = jnp.tanh(pre)                                  # f32 tanh (v5e-safe)
        h_all_ref[pl.ds(lo, batch), :] = h

    hfin_ref[...] = h

    # Hoisted decoder matmul over the whole sequence; vocab is padded to a
    # multiple of 128 lanes by the wrapper -> unmasked full-lane stores.
    out_ref[...] = (jnp.dot(h_all_ref[...], wdec_ref[...],
                            preferred_element_type=jnp.float32)
                    + bdec_ref[...])


def rmodule_forward(tokens, hidden, params):
    """Pallas implementation of RModule.forward.

    tokens: int32 [seq, batch]
    hidden: float32 [n_layers=1, batch, hidden_size]
    returns (logits [seq, batch, vocab], hidden [1, batch, hidden_size])
    """
    emb_table = params["emb"]          # [vocab, emb]
    w_ih = params["w_ih"]              # [emb, hidden]
    w_hh = params["w_hh"]              # [hidden, hidden]
    b = params["b"]                    # [1, hidden]  (b_ih + b_hh combined)
    w_dec = params["w_dec"]            # [hidden, vocab]
    b_dec = params["b_dec"]            # [1, vocab]

    seq, batch = tokens.shape
    emb_dim = emb_table.shape[1]
    hidden_size = w_hh.shape[0]
    vocab = w_dec.shape[1]
    sb = seq * batch
    vocab_pad = int(pl.cdiv(vocab, 128)) * 128

    # Embedding lookup (data-dependent gather) stays in XLA; flatten time+batch.
    # TODO(synk): an in-kernel embedding would need a one-hot matmul or DMA gather.
    x_flat = emb_table[tokens].reshape(sb, emb_dim)        # [seq*batch, emb]
    h0 = hidden[0]                                         # [batch, hidden]

    # Zero-pad decoder so the kernel's logits output is lane-dense (last dim % 128 == 0).
    w_dec_p = jnp.zeros((hidden_size, vocab_pad), jnp.float32).at[:, :vocab].set(w_dec)
    b_dec_p = jnp.zeros((1, vocab_pad), jnp.float32).at[:, :vocab].set(b_dec)

    kernel = functools.partial(_rnn_seq_kernel, seq=seq, batch=batch)

    grid_spec = pltpu.PrefetchScalarGridSpec(
        num_scalar_prefetch=0,
        grid=(1,),                                         # single invocation
        in_specs=[
            pl.BlockSpec((sb, emb_dim), lambda i: (0, 0)),           # X (all steps)
            pl.BlockSpec((batch, hidden_size), lambda i: (0, 0)),    # h0
            pl.BlockSpec((emb_dim, hidden_size), lambda i: (0, 0)),  # W_ih
            pl.BlockSpec((hidden_size, hidden_size), lambda i: (0, 0)),  # W_hh
            pl.BlockSpec((1, hidden_size), lambda i: (0, 0)),        # b
            pl.BlockSpec((hidden_size, vocab_pad), lambda i: (0, 0)),  # W_dec (padded)
            pl.BlockSpec((1, vocab_pad), lambda i: (0, 0)),          # b_dec (padded)
        ],
        out_specs=[
            pl.BlockSpec((sb, vocab_pad), lambda i: (0, 0)),         # logits slab
            pl.BlockSpec((batch, hidden_size), lambda i: (0, 0)),    # final hidden
        ],
        scratch_shapes=[pltpu.VMEM((sb, hidden_size), jnp.float32)],  # H (all h_t)
    )

    logits_flat, h_final = pl.pallas_call(
        kernel,
        out_shape=(
            jax.ShapeDtypeStruct((sb, vocab_pad), jnp.float32),
            jax.ShapeDtypeStruct((batch, hidden_size), jnp.float32),
        ),
        grid_spec=grid_spec,
        compiler_params=pltpu.CompilerParams(
            dimension_semantics=("arbitrary",),            # time recurrence is serial
        ),
    )(x_flat, h0, w_ih, w_hh, b, w_dec_p, b_dec_p)

    logits = logits_flat[:, :vocab].reshape(seq, batch, vocab)
    return logits, h_final[None]                           # hidden -> [1, batch, hidden]


def _reference_forward(tokens, hidden, params):
    """Pure-JAX reference (mirrors PyTorch Embedding -> nn.RNN(tanh) -> Linear)."""
    x = params["emb"][tokens]                              # [seq, batch, emb]
    h = hidden[0]

    def step(h_prev, x_t):
        h_new = jnp.tanh(x_t @ params["w_ih"] + h_prev @ params["w_hh"] + params["b"])
        return h_new, h_new @ params["w_dec"] + params["b_dec"]

    h_fin, logits = jax.lax.scan(step, h, x)
    return logits, h_fin[None]


def init_params(key, vocab, hidden_size, emb_dim):
    k1, k2, k3, k4, k5, k6, k7 = jax.random.split(key, 7)
    s_rnn = 1.0 / jnp.sqrt(hidden_size)
    s_dec = 1.0 / jnp.sqrt(hidden_size)
    return {
        # nn.Embedding default init: N(0, 1)
        "emb": jax.random.normal(k1, (vocab, emb_dim), jnp.float32),
        # nn.RNN default init: U(-1/sqrt(H), 1/sqrt(H)); stored transposed
        "w_ih": jax.random.uniform(k2, (emb_dim, hidden_size), jnp.float32, -s_rnn, s_rnn),
        "w_hh": jax.random.uniform(k3, (hidden_size, hidden_size), jnp.float32, -s_rnn, s_rnn),
        # b = b_ih + b_hh, kept 2D [1, H] for clean in-kernel broadcasting
        "b": (jax.random.uniform(k4, (1, hidden_size), jnp.float32, -s_rnn, s_rnn)
              + jax.random.uniform(k5, (1, hidden_size), jnp.float32, -s_rnn, s_rnn)),
        # nn.Linear decoder: U(-1/sqrt(H), 1/sqrt(H)); stored transposed
        "w_dec": jax.random.uniform(k6, (hidden_size, vocab), jnp.float32, -s_dec, s_dec),
        "b_dec": jax.random.uniform(k7, (1, vocab), jnp.float32, -s_dec, s_dec),
    }


if __name__ == "__main__":
    VOCAB = 16          # input_size == output_size
    HIDDEN = 32         # hidden_size
    EMB = 18            # embedding_size (module default)
    SEQ = 8
    BATCH = 2
    N_LAYERS = 1

    key = jax.random.PRNGKey(0)
    k_params, k_tok, k_h = jax.random.split(key, 3)

    params = init_params(k_params, VOCAB, HIDDEN, EMB)
    tokens = jax.random.randint(k_tok, (SEQ, BATCH), 0, VOCAB, dtype=jnp.int32)
    hidden0 = jax.random.normal(k_h, (N_LAYERS, BATCH, HIDDEN), jnp.float32)

    logits, h_out = rmodule_forward(tokens, hidden0, params)
    logits = jax.block_until_ready(logits)
    h_out = jax.block_until_ready(h_out)

    ref_logits, ref_h = _reference_forward(tokens, hidden0, params)
    assert logits.shape == (SEQ, BATCH, VOCAB)
    assert h_out.shape == (N_LAYERS, BATCH, HIDDEN)
    assert jnp.allclose(logits, ref_logits, atol=1e-4, rtol=1e-4)
    assert jnp.allclose(h_out, ref_h, atol=1e-4, rtol=1e-4)

    print("KERNEL_OK")
</pallas_src>

<mosaic_0001>
module attributes {stable_mosaic.version = 11 : i64} {
  func.func @_rnn_seq_kernel(%arg0: i32, %arg1: memref<16x18xf32, #tpu.memory_space<vmem>>, %arg2: memref<2x32xf32, #tpu.memory_space<vmem>>, %arg3: memref<18x32xf32, #tpu.memory_space<vmem>>, %arg4: memref<32x32xf32, #tpu.memory_space<vmem>>, %arg5: memref<1x32xf32, #tpu.memory_space<vmem>>, %arg6: memref<32x128xf32, #tpu.memory_space<vmem>>, %arg7: memref<1x128xf32, #tpu.memory_space<vmem>>, %arg8: memref<16x128xf32, #tpu.memory_space<vmem>>, %arg9: memref<2x32xf32, #tpu.memory_space<vmem>>, %arg10: memref<16x32xf32, #tpu.memory_space<vmem>>) attributes {dimension_semantics = [#tpu.dimension_semantics<arbitrary>], iteration_bounds = array<i64: 1>, scalar_prefetch = 0 : i64, scratch_operands = 1 : i64, tpu.core_type = #tpu.core_type<tc>, window_params = [{pipeline_mode = #tpu.pipeline_mode<synchronous>, transform_indices = @transform_0, window_bounds = array<i64: 16, 18>}, {pipeline_mode = #tpu.pipeline_mode<synchronous>, transform_indices = @transform_1, window_bounds = array<i64: 2, 32>}, {pipeline_mode = #tpu.pipeline_mode<synchronous>, transform_indices = @transform_2, window_bounds = array<i64: 18, 32>}, {pipeline_mode = #tpu.pipeline_mode<synchronous>, transform_indices = @transform_3, window_bounds = array<i64: 32, 32>}, {pipeline_mode = #tpu.pipeline_mode<synchronous>, transform_indices = @transform_4, window_bounds = array<i64: 1, 32>}, {pipeline_mode = #tpu.pipeline_mode<synchronous>, transform_indices = @transform_5, window_bounds = array<i64: 32, 128>}, {pipeline_mode = #tpu.pipeline_mode<synchronous>, transform_indices = @transform_6, window_bounds = array<i64: 1, 128>}, {pipeline_mode = #tpu.pipeline_mode<synchronous>, transform_indices = @transform_7, window_bounds = array<i64: 16, 128>}, {pipeline_mode = #tpu.pipeline_mode<synchronous>, transform_indices = @transform_8, window_bounds = array<i64: 2, 32>}]} {
    %c0 = arith.constant 0 : index
    %c0_0 = arith.constant 0 : index
    %0 = vector.load %arg1[%c0, %c0_0] : memref<16x18xf32, #tpu.memory_space<vmem>>, vector<16x18xf32>
    %c0_1 = arith.constant 0 : index
    %c0_2 = arith.constant 0 : index
    %1 = vector.load %arg3[%c0_1, %c0_2] : memref<18x32xf32, #tpu.memory_space<vmem>>, vector<18x32xf32>
    %cst = arith.constant dense<0.000000e+00> : vector<16x32xf32>
    %2 = tpu.matmul %0, %1, %cst {dimension_numbers = #tpu.dot_dimension_numbers<[1], [0], [0], [1], [0, 0, 1, 1], [], []>} : vector<16x18xf32>, vector<18x32xf32>, vector<16x32xf32> -> vector<16x32xf32>
    %c0_3 = arith.constant 0 : index
    %c0_4 = arith.constant 0 : index
    %3 = vector.load %arg5[%c0_3, %c0_4] : memref<1x32xf32, #tpu.memory_space<vmem>>, vector<1x32xf32>
    %4 = vector.broadcast %3 : vector<1x32xf32> to vector<16x32xf32>
    %5 = arith.addf %2, %4 : vector<16x32xf32>
    %c0_5 = arith.constant 0 : index
    %c0_6 = arith.constant 0 : index
    %6 = vector.load %arg4[%c0_5, %c0_6] : memref<32x32xf32, #tpu.memory_space<vmem>>, vector<32x32xf32>
    %c0_7 = arith.constant 0 : index
    %c0_8 = arith.constant 0 : index
    %7 = vector.load %arg2[%c0_7, %c0_8] : memref<2x32xf32, #tpu.memory_space<vmem>>, vector<2x32xf32>
    %8 = vector.extract_strided_slice %5 {offsets = [0, 0], sizes = [2, 32], strides = [1, 1]} : vector<16x32xf32> to vector<2x32xf32>
    %cst_9 = arith.constant dense<0.000000e+00> : vector<2x32xf32>
    %9 = tpu.matmul %7, %6, %cst_9 {dimension_numbers = #tpu.dot_dimension_numbers<[1], [0], [0], [1], [0, 0, 1, 1], [], []>} : vector<2x32xf32>, vector<32x32xf32>, vector<2x32xf32> -> vector<2x32xf32>
    %10 = arith.addf %8, %9 : vector<2x32xf32>
    %11 = math.tanh %10 : vector<2x32xf32>
    %c0_10 = arith.constant 0 : index
    %c0_11 = arith.constant 0 : index
    %12 = vector.load %arg10[%c0_10, %c0_11] : memref<16x32xf32, #tpu.memory_space<vmem>>, vector<2x32xf32>
    tpu.vector_store %arg10[%c0_10, %c0_11], %11 {strides = array<i32>} : memref<16x32xf32, #tpu.memory_space<vmem>>, vector<2x32xf32>,
    %13 = vector.extract_strided_slice %5 {offsets = [2, 0], sizes = [2, 32], strides = [1, 1]} : vector<16x32xf32> to vector<2x32xf32>
    %cst_12 = arith.constant dense<0.000000e+00> : vector<2x32xf32>
    %14 = tpu.matmul %11, %6, %cst_12 {dimension_numbers = #tpu.dot_dimension_numbers<[1], [0], [0], [1], [0, 0, 1, 1], [], []>} : vector<2x32xf32>, vector<32x32xf32>, vector<2x32xf32> -> vector<2x32xf32>
    %15 = arith.addf %13, %14 : vector<2x32xf32>
    %16 = math.tanh %15 : vector<2x32xf32>
    %c2 = arith.constant 2 : index
    %c0_13 = arith.constant 0 : index
    %17 = vector.load %arg10[%c2, %c0_13] : memref<16x32xf32, #tpu.memory_space<vmem>>, vector<2x32xf32>
    tpu.vector_store %arg10[%c2, %c0_13], %16 {strides = array<i32>} : memref<16x32xf32, #tpu.memory_space<vmem>>, vector<2x32xf32>,
    %18 = vector.extract_strided_slice %5 {offsets = [4, 0], sizes = [2, 32], strides = [1, 1]} : vector<16x32xf32> to vector<2x32xf32>
    %cst_14 = arith.constant dense<0.000000e+00> : vector<2x32xf32>
    %19 = tpu.matmul %16, %6, %cst_14 {dimension_numbers = #tpu.dot_dimension_numbers<[1], [0], [0], [1], [0, 0, 1, 1], [], []>} : vector<2x32xf32>, vector<32x32xf32>, vector<2x32xf32> -> vector<2x32xf32>
    %20 = arith.addf %18, %19 : vector<2x32xf32>
    %21 = math.tanh %20 : vector<2x32xf32>
    %c4 = arith.constant 4 : index
    %c0_15 = arith.constant 0 : index
    %22 = vector.load %arg10[%c4, %c0_15] : memref<16x32xf32, #tpu.memory_space<vmem>>, vector<2x32xf32>
    tpu.vector_store %arg10[%c4, %c0_15], %21 {strides = array<i32>} : memref<16x32xf32, #tpu.memory_space<vmem>>, vector<2x32xf32>,
    %23 = vector.extract_strided_slice %5 {offsets = [6, 0], sizes = [2, 32], strides = [1, 1]} : vector<16x32xf32> to vector<2x32xf32>
    %cst_16 = arith.constant dense<0.000000e+00> : vector<2x32xf32>
    %24 = tpu.matmul %21, %6, %cst_16 {dimension_numbers = #tpu.dot_dimension_numbers<[1], [0], [0], [1], [0, 0, 1, 1], [], []>} : vector<2x32xf32>, vector<32x32xf32>, vector<2x32xf32> -> vector<2x32xf32>
    %25 = arith.addf %23, %24 : vector<2x32xf32>
    %26 = math.tanh %25 : vector<2x32xf32>
    %c6 = arith.constant 6 : index
    %c0_17 = arith.constant 0 : index
    %27 = vector.load %arg10[%c6, %c0_17] : memref<16x32xf32, #tpu.memory_space<vmem>>, vector<2x32xf32>
    tpu.vector_store %arg10[%c6, %c0_17], %26 {strides = array<i32>} : memref<16x32xf32, #tpu.memory_space<vmem>>, vector<2x32xf32>,
    %28 = vector.extract_strided_slice %5 {offsets = [8, 0], sizes = [2, 32], strides = [1, 1]} : vector<16x32xf32> to vector<2x32xf32>
    %cst_18 = arith.constant dense<0.000000e+00> : vector<2x32xf32>
    %29 = tpu.matmul %26, %6, %cst_18 {dimension_numbers = #tpu.dot_dimension_numbers<[1], [0], [0], [1], [0, 0, 1, 1], [], []>} : vector<2x32xf32>, vector<32x32xf32>, vector<2x32xf32> -> vector<2x32xf32>
    %30 = arith.addf %28, %29 : vector<2x32xf32>
    %31 = math.tanh %30 : vector<2x32xf32>
    %c8 = arith.constant 8 : index
    %c0_19 = arith.constant 0 : index
    %32 = vector.load %arg10[%c8, %c0_19] : memref<16x32xf32, #tpu.memory_space<vmem>>, vector<2x32xf32>
    tpu.vector_store %arg10[%c8, %c0_19], %31 {strides = array<i32>} : memref<16x32xf32, #tpu.memory_space<vmem>>, vector<2x32xf32>,
    %33 = vector.extract_strided_slice %5 {offsets = [10, 0], sizes = [2, 32], strides = [1, 1]} : vector<16x32xf32> to vector<2x32xf32>
    %cst_20 = arith.constant dense<0.000000e+00> : vector<2x32xf32>
    %34 = tpu.matmul %31, %6, %cst_20 {dimension_numbers = #tpu.dot_dimension_numbers<[1], [0], [0], [1], [0, 0, 1, 1], [], []>} : vector<2x32xf32>, vector<32x32xf32>, vector<2x32xf32> -> vector<2x32xf32>
    %35 = arith.addf %33, %34 : vector<2x32xf32>
    %36 = math.tanh %35 : vector<2x32xf32>
    %c10 = arith.constant 10 : index
    %c0_21 = arith.constant 0 : index
    %37 = vector.load %arg10[%c10, %c0_21] : memref<16x32xf32, #tpu.memory_space<vmem>>, vector<2x32xf32>
    tpu.vector_store %arg10[%c10, %c0_21], %36 {strides = array<i32>} : memref<16x32xf32, #tpu.memory_space<vmem>>, vector<2x32xf32>,
    %38 = vector.extract_strided_slice %5 {offsets = [12, 0], sizes = [2, 32], strides = [1, 1]} : vector<16x32xf32> to vector<2x32xf32>
    %cst_22 = arith.constant dense<0.000000e+00> : vector<2x32xf32>
    %39 = tpu.matmul %36, %6, %cst_22 {dimension_numbers = #tpu.dot_dimension_numbers<[1], [0], [0], [1], [0, 0, 1, 1], [], []>} : vector<2x32xf32>, vector<32x32xf32>, vector<2x32xf32> -> vector<2x32xf32>
    %40 = arith.addf %38, %39 : vector<2x32xf32>
    %41 = math.tanh %40 : vector<2x32xf32>
    %c12 = arith.constant 12 : index
    %c0_23 = arith.constant 0 : index
    %42 = vector.load %arg10[%c12, %c0_23] : memref<16x32xf32, #tpu.memory_space<vmem>>, vector<2x32xf32>
    tpu.vector_store %arg10[%c12, %c0_23], %41 {strides = array<i32>} : memref<16x32xf32, #tpu.memory_space<vmem>>, vector<2x32xf32>,
    %43 = vector.extract_strided_slice %5 {offsets = [14, 0], sizes = [2, 32], strides = [1, 1]} : vector<16x32xf32> to vector<2x32xf32>
    %cst_24 = arith.constant dense<0.000000e+00> : vector<2x32xf32>
    %44 = tpu.matmul %41, %6, %cst_24 {dimension_numbers = #tpu.dot_dimension_numbers<[1], [0], [0], [1], [0, 0, 1, 1], [], []>} : vector<2x32xf32>, vector<32x32xf32>, vector<2x32xf32> -> vector<2x32xf32>
    %45 = arith.addf %43, %44 : vector<2x32xf32>
    %46 = math.tanh %45 : vector<2x32xf32>
    %c14 = arith.constant 14 : index
    %c0_25 = arith.constant 0 : index
    %47 = vector.load %arg10[%c14, %c0_25] : memref<16x32xf32, #tpu.memory_space<vmem>>, vector<2x32xf32>
    tpu.vector_store %arg10[%c14, %c0_25], %46 {strides = array<i32>} : memref<16x32xf32, #tpu.memory_space<vmem>>, vector<2x32xf32>,
    %c0_26 = arith.constant 0 : index
    %c0_27 = arith.constant 0 : index
    %48 = vector.load %arg9[%c0_26, %c0_27] : memref<2x32xf32, #tpu.memory_space<vmem>>, vector<2x32xf32>
    tpu.vector_store %arg9[%c0_26, %c0_27], %46 {strides = array<i32>} : memref<2x32xf32, #tpu.memory_space<vmem>>, vector<2x32xf32>,
    %c0_28 = arith.constant 0 : index
    %c0_29 = arith.constant 0 : index
    %49 = vector.load %arg10[%c0_28, %c0_29] : memref<16x32xf32, #tpu.memory_space<vmem>>, vector<16x32xf32>
    %c0_30 = arith.constant 0 : index
    %c0_31 = arith.constant 0 : index
    %50 = vector.load %arg6[%c0_30, %c0_31] : memref<32x128xf32, #tpu.memory_space<vmem>>, vector<32x128xf32>
    %cst_32 = arith.constant dense<0.000000e+00> : vector<16x128xf32>
    %51 = tpu.matmul %49, %50, %cst_32 {dimension_numbers = #tpu.dot_dimension_numbers<[1], [0], [0], [1], [0, 0, 1, 1], [], []>} : vector<16x32xf32>, vector<32x128xf32>, vector<16x128xf32> -> vector<16x128xf32>
    %c0_33 = arith.constant 0 : index
    %c0_34 = arith.constant 0 : index
    %52 = vector.load %arg7[%c0_33, %c0_34] : memref<1x128xf32, #tpu.memory_space<vmem>>, vector<1x128xf32>
    %53 = vector.broadcast %52 : vector<1x128xf32> to vector<16x128xf32>
    %54 = arith.addf %51, %53 : vector<16x128xf32>
    %c0_35 = arith.constant 0 : index
    %c0_36 = arith.constant 0 : index
    %55 = vector.load %arg8[%c0_35, %c0_36] : memref<16x128xf32, #tpu.memory_space<vmem>>, vector<16x128xf32>
    tpu.vector_store %arg8[%c0_35, %c0_36], %54 {strides = array<i32>} : memref<16x128xf32, #tpu.memory_space<vmem>>, vector<16x128xf32>,
    return
  }
  func.func @transform_0(%arg0: i32) -> (i32, i32) {
    %c0_i32 = arith.constant 0 : i32
    %c0_i32_0 = arith.constant 0 : i32
    %c0_i32_1 = arith.constant 0 : i32
    return %c0_i32, %c0_i32_0 : i32, i32
  }
  func.func @transform_1(%arg0: i32) -> (i32, i32) {
    %c0_i32 = arith.constant 0 : i32
    %c0_i32_0 = arith.constant 0 : i32
    %c0_i32_1 = arith.constant 0 : i32
    return %c0_i32, %c0_i32_0 : i32, i32
  }
  func.func @transform_2(%arg0: i32) -> (i32, i32) {
    %c0_i32 = arith.constant 0 : i32
    %c0_i32_0 = arith.constant 0 : i32
    %c0_i32_1 = arith.constant 0 : i32
    return %c0_i32, %c0_i32_0 : i32, i32
  }
  func.func @transform_3(%arg0: i32) -> (i32, i32) {
    %c0_i32 = arith.constant 0 : i32
    %c0_i32_0 = arith.constant 0 : i32
    %c0_i32_1 = arith.constant 0 : i32
    return %c0_i32, %c0_i32_0 : i32, i32
  }
  func.func @transform_4(%arg0: i32) -> (i32, i32) {
    %c0_i32 = arith.constant 0 : i32
    %c0_i32_0 = arith.constant 0 : i32
    %c0_i32_1 = arith.constant 0 : i32
    return %c0_i32, %c0_i32_0 : i32, i32
  }
  func.func @transform_5(%arg0: i32) -> (i32, i32) {
    %c0_i32 = arith.constant 0 : i32
    %c0_i32_0 = arith.constant 0 : i32
    %c0_i32_1 = arith.constant 0 : i32
    return %c0_i32, %c0_i32_0 : i32, i32
  }
  func.func @transform_6(%arg0: i32) -> (i32, i32) {
    %c0_i32 = arith.constant 0 : i32
    %c0_i32_0 = arith.constant 0 : i32
    %c0_i32_1 = arith.constant 0 : i32
    return %c0_i32, %c0_i32_0 : i32, i32
  }
  func.func @transform_7(%arg0: i32) -> (i32, i32) {
    %c0_i32 = arith.constant 0 : i32
    %c0_i32_0 = arith.constant 0 : i32
    %c0_i32_1 = arith.constant 0 : i32
    return %c0_i32, %c0_i32_0 : i32, i32
  }
  func.func @transform_8(%arg0: i32) -> (i32, i32) {
    %c0_i32 = arith.constant 0 : i32
    %c0_i32_0 = arith.constant 0 : i32
    %c0_i32_1 = arith.constant 0 : i32
    return %c0_i32, %c0_i32_0 : i32, i32
  }
}

</mosaic_0001>

<bundles_post_ra>
// kernel: tpu_custom_call.1
= control target key start
LH: loop header
LB: loop body
LE: loop exit
PB: predicated region body
PF: predicated region fallthrough
CT: control target
= control target key end

     0   :  { %14 = vsyncpa [#allocation4], 0  ;;  %s804_s0 = inlined_call_operand.hbm [shape: f32[16,18], index: 0, kind: input, shape index: {}]   ;;  %s805_s1 = inlined_call_operand.hbm [shape: f32[2,32], index: 1, kind: input, shape index: {}]   ;;  %s806_s2 = inlined_call_operand.hbm [shape: f32[18,32], index: 2, kind: input, shape index: {}]   ;;  %s807_s3 = inlined_call_operand.hbm [shape: f32[32,32], index: 3, kind: input, shape index: {}]   ;;  %s808_s4 = inlined_call_operand.vmem [shape: f32[1,32], index: 4, kind: input, shape index: {}]   ;;  %s809_s5 = inlined_call_operand.hbm [shape: f32[32,128], index: 5, kind: input, shape index: {}]   ;;  %s810_s6 = inlined_call_operand.vmem [shape: f32[1,128], index: 6, kind: input, shape index: {}]   ;;  %s811_s7 = inlined_call_operand.hbm [shape: f32[16,128], index: 7, kind: output, shape index: {0}]   ;;  %s812_s8 = inlined_call_operand.hbm [shape: f32[2,32], index: 8, kind: output, shape index: {1}]  }
   0x1   :  { %15 = vsyncpa [#allocation7], 0 }
   0x2   :  { %16 = vsyncpa [#allocation10], 0 }
   0x3   :  { %17 = vsyncpa [#allocation5], 0  ;;  %s37_s29 = sshll.u32 %s805_s1, 4  ;;  %s38_s29 = int_to_ptr.hbm [resolvable:$true] %s37_s29 }
   0x4   :  { %18 = vsyncpa [#allocation14], 0  ;;  %s687_s30 = smov [#allocation6]   ;;  %s60_s12 = sshll.u32 %s807_s3, 4  ;;  %s61_s12 = int_to_ptr.hbm [resolvable:$true] %s60_s12 }
   0x5   :  { %s39_s9 = sshll.u32 %s687_s30, 4  ;;  %s688_s13 = smov [#allocation9]   ;;  %s40_s9 = int_to_ptr.vmem [resolvable:$true] %s39_s9 }
   0x6   :  { %42 = dma.hbm_to_vmem [thread:$0]  %s38_s29, 32, %s40_s9, [#allocation7]  }
   0x7   :  { %s62_s14 = sshll.u32 %s688_s13, 4  ;;  %s23_s17 = sshll.u32 %s804_s0, 4  ;;  %s63_s14 = int_to_ptr.vmem [resolvable:$true] %s62_s14  ;;  %s24_s17 = int_to_ptr.hbm [resolvable:$true] %s23_s17 }
   0x8   :  { %s689_s1 = smov 128   ;;  %s690_s18 = smov 8  }
   0x9   :  { %68 = dma.hbm_to_vmem [thread:$0]  %s61_s12, 512, %s63_s14, [#allocation10], %s689_s1, %s689_s1, %s690_s18  }
   0xa   :  { %s47_s21 = sshll.u32 %s806_s2, 4  ;;  %s691_s3 = smov [#allocation3]   ;;  %s48_s21 = int_to_ptr.hbm [resolvable:$true] %s47_s21 }
   0xb   :  { %s25_s22 = sshll.u32 %s691_s3, 4  ;;  %s692_s0 = smov [#allocation8]   ;;  %s26_s22 = int_to_ptr.vmem [resolvable:$true] %s25_s22 }
   0xc   :  { %31 = dma.hbm_to_vmem [thread:$0]  %s24_s17, 256, %s26_s22, [#allocation4], %s689_s1, %s689_s1, %s690_s18  }
   0xd   :  { %s49_s23 = sshll.u32 %s692_s0, 4  ;;  %s75_s26 = sshll.u32 %s809_s5, 4  ;;  %s50_s23 = int_to_ptr.vmem [resolvable:$true] %s49_s23  ;;  %s76_s26 = int_to_ptr.hbm [resolvable:$true] %s75_s26 }
   0xe   :  { %55 = dma.hbm_to_vmem [thread:$0]  %s48_s21, 384, %s50_s23, [#allocation7], %s689_s1, %s689_s1, %s690_s18  }
   0xf   :  { %s693_s2 = smov [#allocation11]  }
  0x10   :  { %s77_s27 = sshll.u32 %s693_s2, 4  ;;  %s78_s27 = int_to_ptr.vmem [resolvable:$true] %s77_s27 }
  0x11   :  { %83 = dma.hbm_to_vmem [thread:$0]  %s76_s26, 512, %s78_s27, [#allocation10], %s689_s1, %s689_s1, %s690_s18  }
  0x12   :  { %677 = dma.done.wait [#allocation4], 256  }
  0x13   :  { %678 = vsyncadd [#allocation4], 4294967040 }
  0x14   :  { %679 = dma.done.wait [#allocation7], 416  }
  0x15   :  { %680 = vsyncadd [#allocation7], 4294966880 }
  0x16   :  { %681 = dma.done.wait [#allocation10], 1024  }
  0x17   :  { %682 = vsyncadd [#allocation10], 4294966272  ;;  %vm122_vm0 = vcmask 1041408   ;;  %v110_v0 = vld [vmem:[#allocation8 + $0x10] sm:$0x3]  ;;  %v109_v2 = vld [vmem:[#allocation8 + $0x8] sm:$0xff] }
  0x18   :  { %v152_v1 = vld [vmem:[#allocation9 + $0x18] sm:$0xff]  ;;  %469 = vmatpush.msk.msra.mxu0 %vm122_vm0, %v110_v0  ;;  %v151_v3 = vld [vmem:[#allocation9 + $0x10] sm:$0xff]  ;;  %v108_v4 = vld [vmem:[#allocation8] sm:$0xff]  ;;  %vm115_vm1 = vcmask 146432   ;;  %vm154_vm2 = vcmask 261120   ;;  %vm180_vm3 = vcmask 254976  }
  0x19   :  { %170 = vmatpush.msra.mxu1 %v152_v1  ;;  %v150_v5 = vld [vmem:[#allocation9 + $0x8] sm:$0xff]  ;;  %197 = vmatpush.msra.mxu3 %v152_v1  ;;  %v106_v6 = vld [vmem:[#allocation3] sm:$0xff]  ;;  %v149_v7 = vld [vmem:[#allocation9] sm:$0xff]  ;;  %vm210_vm4 = vcmask 257026   ;;  %vm241_vm5 = vcmask 259076   ;;  %vm272_vm6 = vcmask 261126  }
  0x1a   :  { %290 = vmatpush.msra.mxu2 %v152_v1  ;;  %140 = vmatpush.msra.mxu0 %v109_v2  ;;  %v153_v8 = vld [vmem:[#allocation6] sm:$0x3]  ;;  %v396_v25 = vld [vmem:[#allocation11 + $0x18] sm:$0xff]  ;;  %v395_v26 = vld [vmem:[#allocation11 + $0x10] sm:$0xff]  ;;  %s452_s11 = sshll.u32 %s812_s8, 4  ;;  %s695_s12 = smov [#allocation12]   ;;  %s453_s11 = int_to_ptr.hbm [resolvable:$true] %s452_s11 }
  0x1b   :  { %171 = vmatpush.msra.mxu1 %v151_v3  ;;  %198 = vmatpush.msra.mxu3 %v151_v3  ;;  %v491_v9 = vld [vmem:[%s808_s4] ss:$0 sm:$0xff]  ;;  %v107_v27 = vld [vmem:[#allocation3 + $0x8] sm:$0xff]  ;;  %v394_v28 = vld [vmem:[#allocation11 + $0x8] sm:$0xff]  ;;  %s436_s13 = sshll.u32 %s695_s12, 4  ;;  %s438_s16 = sshll.u32 %s811_s7, 4  ;;  %s437_s13 = int_to_ptr.vmem [resolvable:$true] %s436_s13  ;;  %s439_s16 = int_to_ptr.hbm [resolvable:$true] %s438_s16 }
  0x1c   :  { %291 = vmatpush.msra.mxu2 %v151_v3  ;;  %141 = vmatpush.msra.mxu0 %v108_v4  ;;  %v393_v29 = vld [vmem:[#allocation11] sm:$0xff] }
  0x1d   :  { %172 = vmatpush.msra.mxu1 %v150_v5  ;;  %470 = vmatmul.msk.f32.vlgmr.msra.gmra.mxu0 %vm115_vm1, %v106_v6  ;;  %v492_v40 = vld [vmem:[%s810_s6] ss:$0 sm:$0xff]  ;;  %s694_s6 = smov [#allocation13]  }
  0x1e   :  { %199 = vmatpush.msra.mxu3 %v150_v5  ;;  %292 = vmatpush.msra.mxu2 %v150_v5  ;;  %s450_s30 = sshll.u32 %s694_s6, 4  ;;  %s451_s30 = int_to_ptr.vmem [resolvable:$true] %s450_s30 }
  0x1f   :  { %173 = vmatpush.msra.mxu1 %v149_v7  ;;  %346 = vmatpush.msrb.mxu0 %v152_v1 }
  0x20   :  { %472 = vmatmul.msk.f32.vlgmr.msra.gmra.mxu1 %vm154_vm2, %v153_v8  ;;  %200 = vmatpush.msra.mxu3 %v149_v7 }
  0x21   :  { %259 = vmatpush.msrb.mxu1 %v152_v1  ;;  %293 = vmatpush.msra.mxu2 %v149_v7 }
  0x22   :  { %228 = vmatpush.msrb.mxu3 %v152_v1  ;;  %347 = vmatpush.msrb.mxu0 %v151_v3 }
  0x23   :  { %260 = vmatpush.msrb.mxu1 %v151_v3  ;;  %419 = vmatpush.msrb.mxu2 %v396_v25 }
  0x24   :  { %229 = vmatpush.msrb.mxu3 %v151_v3  ;;  %348 = vmatpush.msrb.mxu0 %v150_v5 }
  0x25   :  { %261 = vmatpush.msrb.mxu1 %v150_v5  ;;  %471 = vmatmul.msk.f32.gmra.mxu0 %vm115_vm1, %v107_v27 }
  0x26   :  { %230 = vmatpush.msrb.mxu3 %v150_v5  ;;  %349 = vmatpush.msrb.mxu0 %v149_v7 }
  0x27   :  { %262 = vmatpush.msrb.mxu1 %v149_v7  ;;  %420 = vmatpush.msrb.mxu2 %v395_v26 }
  0x28   :  { %231 = vmatpush.msrb.mxu3 %v149_v7 }
  0x29   :  { %376 = vmatpush.msra.mxu1 %v152_v1  ;;  %421 = vmatpush.msrb.mxu2 %v394_v28 }
  0x2b   :  { %377 = vmatpush.msra.mxu1 %v151_v3  ;;  %422 = vmatpush.msrb.mxu2 %v393_v29 }
  0x2d   :  { %378 = vmatpush.msra.mxu1 %v150_v5 }
  0x2f   :  { %379 = vmatpush.msra.mxu1 %v149_v7 }
  0x9a   :  { %v143_v10 = vpop.f32.mrf.mxu0 }
  0x9b   :  { %v144_v11 = vadd.f32 %v491_v9, %v143_v10 }
  0x9d   :  { %v175_v12 = vpop.f32.mrf.mxu1 }
  0x9e   :  { %v178_v13 = vadd.f32 %v175_v12, %v144_v11 }
  0xa0   :  { %493 = vtanh.f32 %v178_v13 }
  0xa2   :  { %v146_v36 = vpop.f32.mrf.mxu0 }
  0xa3   :  { %v147_v37 = vadd.f32 %v491_v9, %v146_v36 }
  0xa6   :  { %v494_v14 = vpop.eup %493 }
  0xa7   :  { %181 = vst.msk [vmem:[#allocation2] sm:$0x3] %vm180_vm3, %v494_v14  ;;  %473 = vmatmul.msk.f32.vlgmr.msra.gmra.mxu3 %vm154_vm2, %v494_v14 }
  0xa8   :  { %316 = vmatpush.msra.mxu3 %v152_v1 }
  0xaa   :  { %317 = vmatpush.msra.mxu3 %v151_v3 }
  0xac   :  { %318 = vmatpush.msra.mxu3 %v150_v5 }
  0xae   :  { %319 = vmatpush.msra.mxu3 %v149_v7 }
 0x12a   :  { %v202_v15 = vpop.f32.mrf.mxu3 }
 0x12b   :  { %v206_v16 = vrot.slane %v202_v15, 6 }
 0x12d   :  { %v208_v17 = vadd.f32 %v206_v16, %v144_v11 }
 0x12f   :  { %495 = vtanh.f32 %v208_v17 }
 0x135   :  { %v496_v18 = vpop.eup %495 }
 0x136   :  { %211 = vst.msk [vmem:[#allocation2] sm:$0xc] %vm210_vm4, %v496_v18  ;;  %v213_v19 = vrot.slane %v496_v18, 2 }
 0x138   :  { %474 = vmatmul.msk.f32.vlgmr.msrb.gmra.mxu3 %vm154_vm2, %v213_v19 }
 0x1bb   :  { %v233_v20 = vpop.f32.mrf.mxu3 }
 0x1bc   :  { %v237_v21 = vrot.slane %v233_v20, 4 }
 0x1be   :  { %v239_v22 = vadd.f32 %v237_v21, %v144_v11 }
 0x1c0   :  { %497 = vtanh.f32 %v239_v22 }
 0x1c6   :  { %v498_v23 = vpop.eup %497 }
 0x1c7   :  { %242 = vst.msk [vmem:[#allocation2] sm:$0x30] %vm241_vm5, %v498_v23  ;;  %v244_v24 = vrot.slane %v498_v23, 4 }
 0x1c9   :  { %475 = vmatmul.msk.f32.vlgmr.msrb.gmra.mxu1 %vm154_vm2, %v244_v24 }
 0x246   :  { %v264_v30 = vpop.f32.mrf.mxu1 }
 0x247   :  { %v268_v31 = vrot.slane %v264_v30, 2 }
 0x249   :  { %v270_v32 = vadd.f32 %v268_v31, %v144_v11 }
 0x24b   :  { %499 = vtanh.f32 %v270_v32 }
 0x251   :  { %v500_v33 = vpop.eup %499 }
 0x252   :  { %273 = vst.msk [vmem:[#allocation2] sm:$0xc0] %vm272_vm6, %v500_v33  ;;  %v275_v34 = vrot.slane %v500_v33, 6 }
 0x254   :  { %476 = vmatmul.msk.f32.vlgmr.msra.gmra.mxu2 %vm154_vm2, %v275_v34 }
 0x259   :  { %v391_v35 = vld [vmem:[#allocation2] sm:$0xff] }
 0x25c   :  { %480 = vmatmul.msk.f32.vlgmr.msrb.gmra.mxu2 %vm154_vm2, %v391_v35 }
 0x2d7   :  { %v295_v38 = vpop.f32.mrf.mxu2 }
 0x2d8   :  { %v298_v39 = vadd.f32 %v295_v38, %v147_v37 }
 0x2da   :  { %501 = vtanh.f32 %v298_v39 }
 0x2df   :  { %v424_v41 = vpop.f32.mrf.mxu2 }
 0x2e0   :  { %v502_v42 = vpop.eup %501  ;;  %v425_v43 = vadd.f32 %v492_v40, %v424_v41 }
 0x2e1   :  { %300 = vst.msk [vmem:[#allocation2 + $0x8] sm:$0x3] %vm180_vm3, %v502_v42  ;;  %477 = vmatmul.msk.f32.vlgmr.msra.gmra.mxu3 %vm154_vm2, %v502_v42 }
 0x2e2   :  { %430 = vst [vmem:[#allocation12] sm:$0xff] %v425_v43 }
 0x364   :  { %v321_v44 = vpop.f32.mrf.mxu3 }
 0x365   :  { %v325_v45 = vrot.slane %v321_v44, 6 }
 0x367   :  { %v327_v46 = vadd.f32 %v325_v45, %v147_v37 }
 0x369   :  { %503 = vtanh.f32 %v327_v46 }
 0x36f   :  { %v504_v47 = vpop.eup %503 }
 0x370   :  { %329 = vst.msk [vmem:[#allocation2 + $0x8] sm:$0xc] %vm210_vm4, %v504_v47  ;;  %v331_v48 = vrot.slane %v504_v47, 2 }
 0x372   :  { %478 = vmatmul.msk.f32.vlgmr.msrb.gmra.mxu0 %vm154_vm2, %v331_v48 }
 0x3ef   :  { %v351_v49 = vpop.f32.mrf.mxu0 }
 0x3f0   :  { %v355_v50 = vrot.slane %v351_v49, 4 }
 0x3f2   :  { %v357_v51 = vadd.f32 %v355_v50, %v147_v37 }
 0x3f4   :  { %505 = vtanh.f32 %v357_v51 }
 0x3fa   :  { %v506_v52 = vpop.eup %505 }
 0x3fb   :  { %359 = vst.msk [vmem:[#allocation2 + $0x8] sm:$0x30] %vm241_vm5, %v506_v52  ;;  %v361_v53 = vrot.slane %v506_v52, 4 }
 0x3fd   :  { %479 = vmatmul.msk.f32.vlgmr.msra.gmra.mxu1 %vm154_vm2, %v361_v53 }
 0x47a   :  { %v381_v54 = vpop.f32.mrf.mxu1 }
 0x47b   :  { %v385_v55 = vrot.slane %v381_v54, 2 }
 0x47d   :  { %v387_v56 = vadd.f32 %v385_v55, %v147_v37 }
 0x47f   :  { %507 = vtanh.f32 %v387_v56 }
 0x485   :  { %v508_v57 = vpop.eup %507 }
 0x486   :  { %389 = vst.msk [vmem:[#allocation2 + $0x8] sm:$0xc0] %vm272_vm6, %v508_v57 }
 0x487   :  { %390 = vst.msk [vmem:[#allocation13 - $0x6] sm:$0xc0] %vm272_vm6, %v508_v57 }
 0x488   :  { %455 = dma.vmem_to_hbm [thread:$0]  %s451_s30, 32, %s453_s11, [#allocation14]  }
 0x48d   :  { %v392_v58 = vld [vmem:[#allocation2 + $0x8] sm:$0xff] }
 0x48e   :  { %481 = vmatmul.msk.f32.gmra.mxu2 %vm154_vm2, %v392_v58 }
 0x511   :  { %v427_v59 = vpop.f32.mrf.mxu2 }
 0x512   :  { %v428_v60 = vadd.f32 %v492_v40, %v427_v59 }
 0x514   :  { %431 = vst [vmem:[#allocation12 + $0x8] sm:$0xff] %v428_v60 }
 0x515   :  { %444 = dma.vmem_to_hbm [thread:$0]  %s437_s13, 256, %s439_s16, [#allocation5], %s689_s1, %s689_s1, %s690_s18  }
 0x516   :  { %683 = dma.done.wait [#allocation5], 256  }
 0x517   :  { %684 = vsyncadd [#allocation5], 4294967040 }
 0x518   :  { %685 = dma.done.wait [#allocation14], 32  }
 0x519   :  { %686 = vsyncadd [#allocation14], 4294967264 }
 0x51a   :  { %464 = vsyncpa [#allocation4], 1 }
 0x51b   :  { %465 = vsyncpa [#allocation7], 1 }
 0x51c   :  { %466 = vsyncpa [#allocation10], 1 }
 0x51d   :  { %467 = vsyncpa [#allocation5], 1 }
 0x51e   :  { %468 = vsyncpa [#allocation14], 1 }

</bundles_post_ra>
